<compile_context>
chip_gen: v7x
topology: tpu7x:2x2x1
jax: 0.10.0
libtpu: 0.0.40
codegen_flags: <defaults>
</compile_context>

<pallas_src>
import functools

import jax
import jax.numpy as jnp
from jax.experimental import pallas as pl
from jax.experimental.pallas import tpu as pltpu

LANE = 128


def _round_up(x: int, m: int) -> int:
    return (x + m - 1) // m * m


def _pad_c(c: int) -> int:
    # Lane-dense per-layer channel width (>= 128, multiple of 128).
    return _round_up(max(c, LANE), LANE)


# ----------------------------------------------------------------------------
# Fused Pallas kernel: all GCN layers in one program.
#   refs = [adj_ref, x_ref, w0_ref, b0_ref, w1_ref, b1_ref, ..., o_ref]
#   adj_ref : (Np, Np)          bf16  normalized adjacency (zero-padded)
#   x_ref   : (Np, C0p)         f32   node features, channel-padded per layer 0
#   wi_ref  : (Cin_p_i, Cout_p_i) bf16 per-layer zero-padded weight
#   bi_ref  : (1, Cout_p_i)     f32   per-layer zero-padded bias
#   o_ref   : (Np, CLp)         f32   lane-dense output slab
# ----------------------------------------------------------------------------
def fused_gcn_kernel(*refs, layer_dims_padded):
    adj_ref = refs[0]
    x_ref = refs[1]
    o_ref = refs[-1]
    wb_refs = refs[2:-1]
    num_layers = len(layer_dims_padded)

    adj = adj_ref[...]          # bf16, stays resident in VMEM for all layers
    h = x_ref[...]              # f32 activations stay on-chip across layers

    for i in range(num_layers):
        c_in_p, c_out_p = layer_dims_padded[i]
        w = wb_refs[2 * i][...]          # (c_in_p, c_out_p) bf16
        b = wb_refs[2 * i + 1][...]      # (1, c_out_p)      f32

        if c_in_p <= c_out_p:
            # (A_hat @ H) @ W : the N^2 matmul contracts the thinner channel dim.
            agg = jnp.dot(adj, h.astype(jnp.bfloat16),
                          preferred_element_type=jnp.float32)
            h = jnp.dot(agg.astype(jnp.bfloat16), w,
                        preferred_element_type=jnp.float32) + b
        else:
            # A_hat @ (H @ W)
            hw = jnp.dot(h.astype(jnp.bfloat16), w,
                         preferred_element_type=jnp.float32)
            h = jnp.dot(adj, hw.astype(jnp.bfloat16),
                        preferred_element_type=jnp.float32) + b

        if i < num_layers - 1:
            h = jnp.maximum(h, 0.0)      # ReLU in f32 (VPU)

    o_ref[...] = h.astype(o_ref.dtype)


def _vmem_budget_bytes(np_, layer_dims_padded):
    """Derive vmem_limit_bytes from actual resident buffers, per-generation."""
    max_cp = max(co for _, co in layer_dims_padded + [layer_dims_padded[0][::-1]])
    adj_b = 2 * np_ * np_                                  # bf16 adjacency
    act_b = 3 * 4 * np_ * max_cp                           # h / agg / output (f32)
    w_b = sum(2 * ci * co for ci, co in layer_dims_padded)  # bf16 weights
    b_b = sum(4 * co for _, co in layer_dims_padded)
    need = adj_b + act_b + w_b + b_b + (8 << 20)           # + compiler headroom
    try:
        cap = pltpu.get_tpu_info().vmem_capacity_bytes     # 128 MiB v5e/v6e, 64 MiB v7x
    except Exception:
        cap = 64 << 20
    return int(min(max(need, 16 << 20), int(cap * 0.75)))


def fused_mesh_encoder(adj, x, w_list, b_list, layer_dims_padded):
    np_, c0p = x.shape
    clp = layer_dims_padded[-1][1]

    in_specs = [
        pl.BlockSpec((np_, np_), lambda: (0, 0)),   # A_hat (bf16), DMA'd once
        pl.BlockSpec((np_, c0p), lambda: (0, 0)),   # X (lane-dense)
    ]
    operands = [adj, x]
    for w, b in zip(w_list, b_list):
        in_specs.append(pl.BlockSpec(w.shape, lambda: (0, 0)))
        in_specs.append(pl.BlockSpec(b.shape, lambda: (0, 0)))
        operands.append(w)
        operands.append(b)

    kernel = functools.partial(
        fused_gcn_kernel, layer_dims_padded=tuple(layer_dims_padded)
    )
    return pl.pallas_call(
        kernel,
        out_shape=jax.ShapeDtypeStruct((np_, clp), jnp.float32),
        in_specs=in_specs,
        out_specs=pl.BlockSpec((np_, clp), lambda: (0, 0)),
        compiler_params=pltpu.CompilerParams(
            vmem_limit_bytes=_vmem_budget_bytes(np_, list(layer_dims_padded))
        ),
    )(*operands)


# ----------------------------------------------------------------------------
# Glue: symmetric-normalized dense adjacency from edge_index (PyG gcn_norm).
# Built with one-hot matmuls (no serialized scatter on TPU); duplicate edges
# accumulate, matching PyG.  Topology-only — memoize per mesh outside the hot
# loop when edge_index is static.
# ----------------------------------------------------------------------------
def normalized_adjacency(edge_index, num_nodes):
    src = edge_index[0]
    dst = edge_index[1]
    d_oh = jax.nn.one_hot(dst, num_nodes, dtype=jnp.float32)   # (E, N)
    s_oh = jax.nn.one_hot(src, num_nodes, dtype=jnp.float32)   # (E, N)
    a = jnp.dot(d_oh.T, s_oh)                                  # A[dst, src] += 1
    a = a + jnp.eye(num_nodes, dtype=jnp.float32)              # self-loops
    deg = a.sum(axis=1)
    dinv = jnp.where(deg > 0, 1.0 / jnp.sqrt(deg), 0.0)
    return dinv[:, None] * a * dinv[None, :]


# ----------------------------------------------------------------------------
# MeshEncoder forward
# ----------------------------------------------------------------------------
def mesh_encoder_forward(x, edge_index, params):
    """params: list of (W, b) per layer; ReLU after every layer except the last."""
    n, c_in = x.shape
    hidden = params[-1][0].shape[1]
    assert params[0][0].shape[0] == c_in

    # Node dim padded to 128 (Np is both M and K of the dominant bf16 matmul).
    # TODO(synk): consider 256 on v6e/v7x to fill the 256x256 MXU per pass.
    np_ = _round_up(max(n, LANE), LANE)

    # Per-layer padded channel widths.
    layer_dims_padded = []
    for (w, _) in params:
        ci, co = w.shape
        layer_dims_padded.append((_pad_c(ci), _pad_c(co)))

    # Adjacency: f32 build, bf16 storage for the MXU fast path, zero-padded.
    adj = normalized_adjacency(edge_index, n)
    adj = jnp.pad(adj, ((0, np_ - n), (0, np_ - n))).astype(jnp.bfloat16)

    # Node features, channel-padded to layer 0's padded input width.
    c0p = layer_dims_padded[0][0]
    xp = jnp.pad(x.astype(jnp.float32), ((0, np_ - n), (0, c0p - c_in)))

    # Per-layer zero-padded weights (bf16) and biases (f32, shape (1, Cout_p)).
    w_list, b_list = [], []
    for (w, b), (cip, cop) in zip(params, layer_dims_padded):
        ci, co = w.shape
        w_list.append(
            jnp.pad(w.astype(jnp.float32), ((0, cip - ci), (0, cop - co)))
            .astype(jnp.bfloat16)
        )
        b_list.append(jnp.pad(b.astype(jnp.float32), (0, cop - co))[None, :])

    out = fused_mesh_encoder(adj, xp, w_list, b_list, layer_dims_padded)
    return out[:n, :hidden]


def init_params(key, in_channels, hidden_channels, num_layers=3):
    dims = [in_channels] + [hidden_channels] * (num_layers - 1) + [hidden_channels]
    params = []
    for i in range(num_layers):
        key, kw = jax.random.split(key)
        fan_in = dims[i]
        w = jax.random.normal(kw, (dims[i], dims[i + 1]), jnp.float32) / jnp.sqrt(
            jnp.float32(fan_in)
        )
        b = jnp.zeros((dims[i + 1],), jnp.float32)
        params.append((w, b))
    return params


if __name__ == "__main__":
    key = jax.random.PRNGKey(0)

    num_nodes = 64
    in_channels = 16
    hidden_channels = 32
    num_layers = 3

    # Deterministic node features.
    key, kx = jax.random.split(key)
    x = jax.random.normal(kx, (num_nodes, in_channels), jnp.float32)

    # Deterministic ring graph (bidirectional edges), edge_index shape (2, E).
    src = jnp.arange(num_nodes, dtype=jnp.int32)
    dst = (src + 1) % num_nodes
    edge_index = jnp.concatenate(
        [jnp.stack([src, dst], axis=0), jnp.stack([dst, src], axis=0)], axis=1
    )

    params = init_params(key, in_channels, hidden_channels, num_layers)

    out = mesh_encoder_forward(x, edge_index, params)
    out = jax.block_until_ready(out)
    assert out.shape == (num_nodes, hidden_channels)
    print("KERNEL_OK")
</pallas_src>

<mosaic_0001>
module attributes {stable_mosaic.version = 11 : i64} {
  func.func @fused_gcn_kernel(%arg0: memref<128x128xbf16, #tpu.memory_space<vmem>>, %arg1: memref<128x128xf32, #tpu.memory_space<vmem>>, %arg2: memref<128x128xbf16, #tpu.memory_space<vmem>>, %arg3: memref<1x128xf32, #tpu.memory_space<vmem>>, %arg4: memref<128x128xbf16, #tpu.memory_space<vmem>>, %arg5: memref<1x128xf32, #tpu.memory_space<vmem>>, %arg6: memref<128x128xbf16, #tpu.memory_space<vmem>>, %arg7: memref<1x128xf32, #tpu.memory_space<vmem>>, %arg8: memref<128x128xf32, #tpu.memory_space<vmem>>) attributes {dimension_semantics = [], scalar_prefetch = 0 : i64, scratch_operands = 0 : i64, tpu.core_type = #tpu.core_type<tc>} {
    %c0 = arith.constant 0 : index
    %c0_0 = arith.constant 0 : index
    %0 = vector.load %arg0[%c0, %c0_0] : memref<128x128xbf16, #tpu.memory_space<vmem>>, vector<128x128xbf16>
    %c0_1 = arith.constant 0 : index
    %c0_2 = arith.constant 0 : index
    %1 = vector.load %arg1[%c0_1, %c0_2] : memref<128x128xf32, #tpu.memory_space<vmem>>, vector<128x128xf32>
    %c0_3 = arith.constant 0 : index
    %c0_4 = arith.constant 0 : index
    %2 = vector.load %arg2[%c0_3, %c0_4] : memref<128x128xbf16, #tpu.memory_space<vmem>>, vector<128x128xbf16>
    %c0_5 = arith.constant 0 : index
    %c0_6 = arith.constant 0 : index
    %3 = vector.load %arg3[%c0_5, %c0_6] : memref<1x128xf32, #tpu.memory_space<vmem>>, vector<1x128xf32>
    %4 = arith.truncf %1 : vector<128x128xf32> to vector<128x128xbf16>
    %cst = arith.constant dense<0.000000e+00> : vector<128x128xf32>
    %5 = tpu.matmul %0, %4, %cst {dimension_numbers = #tpu.dot_dimension_numbers<[1], [0], [0], [1], [0, 0, 1, 1], [], []>} : vector<128x128xbf16>, vector<128x128xbf16>, vector<128x128xf32> -> vector<128x128xf32>
    %6 = arith.truncf %5 : vector<128x128xf32> to vector<128x128xbf16>
    %cst_7 = arith.constant dense<0.000000e+00> : vector<128x128xf32>
    %7 = tpu.matmul %6, %2, %cst_7 {dimension_numbers = #tpu.dot_dimension_numbers<[1], [0], [0], [1], [0, 0, 1, 1], [], []>} : vector<128x128xbf16>, vector<128x128xbf16>, vector<128x128xf32> -> vector<128x128xf32>
    %8 = vector.broadcast %3 : vector<1x128xf32> to vector<128x128xf32>
    %9 = arith.addf %7, %8 : vector<128x128xf32>
    %cst_8 = arith.constant 0.000000e+00 : f32
    %10 = vector.broadcast %cst_8 : f32 to vector<128x128xf32>
    %11 = arith.maximumf %9, %10 : vector<128x128xf32>
    %c0_9 = arith.constant 0 : index
    %c0_10 = arith.constant 0 : index
    %12 = vector.load %arg4[%c0_9, %c0_10] : memref<128x128xbf16, #tpu.memory_space<vmem>>, vector<128x128xbf16>
    %c0_11 = arith.constant 0 : index
    %c0_12 = arith.constant 0 : index
    %13 = vector.load %arg5[%c0_11, %c0_12] : memref<1x128xf32, #tpu.memory_space<vmem>>, vector<1x128xf32>
    %14 = arith.truncf %11 : vector<128x128xf32> to vector<128x128xbf16>
    %cst_13 = arith.constant dense<0.000000e+00> : vector<128x128xf32>
    %15 = tpu.matmul %0, %14, %cst_13 {dimension_numbers = #tpu.dot_dimension_numbers<[1], [0], [0], [1], [0, 0, 1, 1], [], []>} : vector<128x128xbf16>, vector<128x128xbf16>, vector<128x128xf32> -> vector<128x128xf32>
    %16 = arith.truncf %15 : vector<128x128xf32> to vector<128x128xbf16>
    %cst_14 = arith.constant dense<0.000000e+00> : vector<128x128xf32>
    %17 = tpu.matmul %16, %12, %cst_14 {dimension_numbers = #tpu.dot_dimension_numbers<[1], [0], [0], [1], [0, 0, 1, 1], [], []>} : vector<128x128xbf16>, vector<128x128xbf16>, vector<128x128xf32> -> vector<128x128xf32>
    %18 = vector.broadcast %13 : vector<1x128xf32> to vector<128x128xf32>
    %19 = arith.addf %17, %18 : vector<128x128xf32>
    %cst_15 = arith.constant 0.000000e+00 : f32
    %20 = vector.broadcast %cst_15 : f32 to vector<128x128xf32>
    %21 = arith.maximumf %19, %20 : vector<128x128xf32>
    %c0_16 = arith.constant 0 : index
    %c0_17 = arith.constant 0 : index
    %22 = vector.load %arg6[%c0_16, %c0_17] : memref<128x128xbf16, #tpu.memory_space<vmem>>, vector<128x128xbf16>
    %c0_18 = arith.constant 0 : index
    %c0_19 = arith.constant 0 : index
    %23 = vector.load %arg7[%c0_18, %c0_19] : memref<1x128xf32, #tpu.memory_space<vmem>>, vector<1x128xf32>
    %24 = arith.truncf %21 : vector<128x128xf32> to vector<128x128xbf16>
    %cst_20 = arith.constant dense<0.000000e+00> : vector<128x128xf32>
    %25 = tpu.matmul %0, %24, %cst_20 {dimension_numbers = #tpu.dot_dimension_numbers<[1], [0], [0], [1], [0, 0, 1, 1], [], []>} : vector<128x128xbf16>, vector<128x128xbf16>, vector<128x128xf32> -> vector<128x128xf32>
    %26 = arith.truncf %25 : vector<128x128xf32> to vector<128x128xbf16>
    %cst_21 = arith.constant dense<0.000000e+00> : vector<128x128xf32>
    %27 = tpu.matmul %26, %22, %cst_21 {dimension_numbers = #tpu.dot_dimension_numbers<[1], [0], [0], [1], [0, 0, 1, 1], [], []>} : vector<128x128xbf16>, vector<128x128xbf16>, vector<128x128xf32> -> vector<128x128xf32>
    %28 = vector.broadcast %23 : vector<1x128xf32> to vector<128x128xf32>
    %29 = arith.addf %27, %28 : vector<128x128xf32>
    %c0_22 = arith.constant 0 : index
    %c0_23 = arith.constant 0 : index
    %30 = vector.load %arg8[%c0_22, %c0_23] : memref<128x128xf32, #tpu.memory_space<vmem>>, vector<128x128xf32>
    tpu.vector_store %arg8[%c0_22, %c0_23], %29 {strides = array<i32>} : memref<128x128xf32, #tpu.memory_space<vmem>>, vector<128x128xf32>,
    return
  }
}

</mosaic_0001>

<bundles_post_ra>
// kernel: tpu_custom_call.1
= control target key start
LH: loop header
LB: loop body
LE: loop exit
PB: predicated region body
PF: predicated region fallthrough
CT: control target
= control target key end

     0   :  { %13 = vsyncpa [#allocation3], 0  ;;  %s1788_s0 = inlined_call_operand.hbm [shape: bf16[128,128], index: 0, kind: input, shape index: {}]   ;;  %s1789_s1 = inlined_call_operand.hbm [shape: f32[128,128], index: 1, kind: input, shape index: {}]   ;;  %s1790_s2 = inlined_call_operand.hbm [shape: bf16[128,128], index: 2, kind: input, shape index: {}]   ;;  %s1791_s3 = inlined_call_operand.vmem [shape: f32[1,128], index: 3, kind: input, shape index: {}]   ;;  %s1792_s4 = inlined_call_operand.hbm [shape: bf16[128,128], index: 4, kind: input, shape index: {}]   ;;  %s1793_s5 = inlined_call_operand.vmem [shape: f32[1,128], index: 5, kind: input, shape index: {}]   ;;  %s1794_s6 = inlined_call_operand.hbm [shape: bf16[128,128], index: 6, kind: input, shape index: {}]   ;;  %s1795_s7 = inlined_call_operand.vmem [shape: f32[1,128], index: 7, kind: input, shape index: {}]   ;;  %s1796_s8 = inlined_call_operand.hbm [shape: f32[128,128], index: 8, kind: output, shape index: {}]  }
   0x1   :  { %14 = vsyncpa [#allocation6], 0 }
   0x2   :  { %15 = vsyncpa [#allocation9], 0 }
   0x3   :  { %16 = vsyncpa [#allocation4], 0  ;;  %s1594_s27 = smov [#allocation5]   ;;  %s1454_s9 = scalar_lea.hbm %s1789_s1, 2048 }
   0x4   :  { %s34_s28 = sshll.u32 %s1594_s27, 4  ;;  %p1455_p0 = scmp.ne.s32.totalorder %s1789_s1, %s1454_s9  ;;  %s35_s28 = int_to_ptr.vmem [resolvable:$true] %s34_s28 }
   0x5   :  { %p1458_p1 = scmp.lt.u32.totalorder %s1454_s9, %s1789_s1 }
   0x7   :  { %p1460_p2 = pnand %p1458_p1, %p1455_p0 }
   0x9   :  { %1463 = shalt.err (!%p1460_p2)
}
   0xa   :  { %s1464_s14 = scalar_lea.vmem %s35_s28, 2048  ;;  %p1469_p4 = scmp.lt.s32.totalorder %s35_s28, %s35_s28 }
   0xb   :  { %p1465_p3 = scmp.ne.s32.totalorder %s35_s28, %s1464_s14  ;;  %p1470_p5 = scmp.lt.s32.totalorder %s1464_s14, %s1464_s14 }
   0xd   :  { %p1471_p6 = por %p1470_p5, %p1469_p4 }
   0xf   :  { %p1472_p7 = pnand %p1471_p6, %p1465_p3 }
  0x11   :  { %1475 = shalt.err (!%p1472_p7)
}
  0x12   :  { %s1595_s15 = smov 128   ;;  %s1596_s16 = smov 8  }
  0x13   :  { %40 = dma.hbm_to_vmem [thread:$0]  %s1789_s1, 2048, %s35_s28, [#allocation6], %s1595_s15, %s1595_s15, %s1596_s16  }
  0x14   :  { %s1597_s19 = smov [#allocation8]   ;;  %s1598_s21 = smov [#allocation2]  }
  0x15   :  { %s60_s20 = sshll.u32 %s1597_s19, 4  ;;  %s22_s22 = sshll.u32 %s1598_s21, 4  ;;  %s61_s20 = int_to_ptr.vmem [resolvable:$true] %s60_s20  ;;  %s23_s22 = int_to_ptr.vmem [resolvable:$true] %s22_s22 }
  0x16   :  { %s1476_s25 = scalar_lea.hbm %s1792_s4, 1024 }
  0x17   :  { %p1477_p8 = scmp.ne.s32.totalorder %s1792_s4, %s1476_s25  ;;  %p1480_p9 = scmp.lt.u32.totalorder %s1476_s25, %s1792_s4 }
  0x19   :  { %p1482_p10 = pnand %p1480_p9, %p1477_p8 }
  0x1b   :  { %1485 = shalt.err (!%p1482_p10)
}
  0x1c   :  { %s1486_s1 = scalar_lea.vmem %s61_s20, 1024  ;;  %p1491_p12 = scmp.lt.s32.totalorder %s61_s20, %s61_s20 }
  0x1d   :  { %p1487_p11 = scmp.ne.s32.totalorder %s61_s20, %s1486_s1  ;;  %p1492_p13 = scmp.lt.s32.totalorder %s1486_s1, %s1486_s1 }
  0x1f   :  { %p1493_p0 = por %p1492_p13, %p1491_p12 }
  0x21   :  { %p1494_p1 = pnand %p1493_p0, %p1487_p11 }
  0x23   :  { %1497 = shalt.err (!%p1494_p1)
}
  0x24   :  { %s1599_s28 = smov 64   ;;  %s1600_s9 = smov 4  }
  0x25   :  { %66 = dma.hbm_to_vmem [thread:$0]  %s1792_s4, 1024, %s61_s20, [#allocation9], %s1599_s28, %s1599_s28, %s1600_s9  }
  0x26   :  { %s1498_s14 = scalar_lea.hbm %s1788_s0, 1024 }
  0x27   :  { %p1499_p2 = scmp.ne.s32.totalorder %s1788_s0, %s1498_s14  ;;  %p1502_p3 = scmp.lt.u32.totalorder %s1498_s14, %s1788_s0 }
  0x29   :  { %p1504_p4 = pnand %p1502_p3, %p1499_p2 }
  0x2b   :  { %1507 = shalt.err (!%p1504_p4)
}
  0x2c   :  { %s1508_s23 = scalar_lea.vmem %s23_s22, 1024  ;;  %p1513_p6 = scmp.lt.s32.totalorder %s23_s22, %s23_s22 }
  0x2d   :  { %p1509_p5 = scmp.ne.s32.totalorder %s23_s22, %s1508_s23  ;;  %p1514_p7 = scmp.lt.s32.totalorder %s1508_s23, %s1508_s23 }
  0x2f   :  { %p1515_p8 = por %p1514_p7, %p1513_p6 }
  0x31   :  { %p1516_p9 = pnand %p1515_p8, %p1509_p5 }
  0x33   :  { %1519 = shalt.err (!%p1516_p9)
}
  0x34   :  { %28 = dma.hbm_to_vmem [thread:$0]  %s1788_s0, 1024, %s23_s22, [#allocation3], %s1599_s28, %s1599_s28, %s1600_s9  }
  0x35   :  { %s1601_s24 = smov [#allocation7]   ;;  %s1602_s26 = smov [#allocation10]  }
  0x36   :  { %s46_s25 = sshll.u32 %s1601_s24, 4  ;;  %s74_s27 = sshll.u32 %s1602_s26, 4  ;;  %s47_s25 = int_to_ptr.vmem [resolvable:$true] %s46_s25  ;;  %s75_s27 = int_to_ptr.vmem [resolvable:$true] %s74_s27 }
  0x37   :  { %s1520_s1 = scalar_lea.hbm %s1790_s2, 1024 }
  0x38   :  { %p1521_p10 = scmp.ne.s32.totalorder %s1790_s2, %s1520_s1  ;;  %p1524_p11 = scmp.lt.u32.totalorder %s1520_s1, %s1790_s2 }
  0x3a   :  { %p1526_p12 = pnand %p1524_p11, %p1521_p10 }
  0x3c   :  { %1529 = shalt.err (!%p1526_p12)
}
  0x3d   :  { %s1530_s0 = scalar_lea.vmem %s47_s25, 1024  ;;  %p1535_p0 = scmp.lt.s32.totalorder %s47_s25, %s47_s25 }
  0x3e   :  { %p1531_p13 = scmp.ne.s32.totalorder %s47_s25, %s1530_s0  ;;  %p1536_p1 = scmp.lt.s32.totalorder %s1530_s0, %s1530_s0 }
  0x40   :  { %p1537_p2 = por %p1536_p1, %p1535_p0 }
  0x42   :  { %p1538_p3 = pnand %p1537_p2, %p1531_p13 }
  0x44   :  { %1541 = shalt.err (!%p1538_p3)
}
  0x45   :  { %52 = dma.hbm_to_vmem [thread:$0]  %s1790_s2, 1024, %s47_s25, [#allocation6], %s1599_s28, %s1599_s28, %s1600_s9  }
  0x46   :  { %s1542_s19 = scalar_lea.hbm %s1794_s6, 1024 }
  0x47   :  { %p1543_p4 = scmp.ne.s32.totalorder %s1794_s6, %s1542_s19  ;;  %p1546_p5 = scmp.lt.u32.totalorder %s1542_s19, %s1794_s6 }
  0x49   :  { %p1548_p6 = pnand %p1546_p5, %p1543_p4 }
  0x4b   :  { %1551 = shalt.err (!%p1548_p6)
}
  0x4c   :  { %s1552_s24 = scalar_lea.vmem %s75_s27, 1024  ;;  %p1557_p8 = scmp.lt.s32.totalorder %s75_s27, %s75_s27 }
  0x4d   :  { %p1553_p7 = scmp.ne.s32.totalorder %s75_s27, %s1552_s24  ;;  %p1558_p9 = scmp.lt.s32.totalorder %s1552_s24, %s1552_s24 }
  0x4f   :  { %p1559_p10 = por %p1558_p9, %p1557_p8 }
  0x51   :  { %p1560_p11 = pnand %p1559_p10, %p1553_p7 }
  0x53   :  { %1563 = shalt.err (!%p1560_p11)
}
  0x54   :  { %80 = dma.hbm_to_vmem [thread:$0]  %s1794_s6, 1024, %s75_s27, [#allocation9], %s1599_s28, %s1599_s28, %s1600_s9  }
  0x55   :  { %1586 = dma.done.wait [#allocation3], 1024  }
  0x56   :  { %1587 = vsyncadd [#allocation3], 4294966272 }
  0x57   :  { %1588 = dma.done.wait [#allocation6], 3072  }
  0x58   :  { %1589 = vsyncadd [#allocation6], 4294964224 }
  0x59   :  { %1590 = dma.done.wait [#allocation9], 2048  }
  0x5a   :  { %1591 = vsyncadd [#allocation9], 4294965248  ;;  %v115_v0 = vld [vmem:[#allocation5] sm:$0xff]  ;;  %v116_v1 = vld [vmem:[#allocation5 + $0x8] sm:$0xff] }
  0x5b   :  { %v117_v2 = vld [vmem:[#allocation5 + $0x10] sm:$0xff]  ;;  %v148_v3 = vpack.c.bf16 %v116_v1, %v115_v0  ;;  %v118_v4 = vld [vmem:[#allocation5 + $0x18] sm:$0xff]  ;;  %v119_v6 = vld [vmem:[#allocation5 + $0x20] sm:$0xff] }
  0x5c   :  { %v149_v5 = vpack.c.bf16 %v118_v4, %v117_v2  ;;  %v120_v7 = vld [vmem:[#allocation5 + $0x28] sm:$0xff]  ;;  %v121_v8 = vld [vmem:[#allocation5 + $0x30] sm:$0xff]  ;;  %v122_v10 = vld [vmem:[#allocation5 + $0x38] sm:$0xff] }
  0x5d   :  { %1220 = vmatprep.subr.bf16.mxu0 %v148_v3  ;;  %v150_v9 = vpack.c.bf16 %v120_v7, %v119_v6  ;;  %v1724_v11 = vld [vmem:[#allocation2] sm:$0xff]   ;;  %v151_v12 = vpack.c.bf16 %v122_v10, %v121_v8  ;;  %v124_v14 = vld [vmem:[#allocation5 + $0x48] sm:$0xff]  ;;  %v125_v15 = vld [vmem:[#allocation5 + $0x50] sm:$0xff] }
  0x5e   :  { %1221 = vmatpush3.bf16.msra.mxu0 %v148_v3  ;;  %1236 = vmatprep.mubr.bf16.mxu0 %v1724_v11  ;;  %v123_v13 = vld [vmem:[#allocation5 + $0x40] sm:$0xff]  ;;  %v126_v17 = vld [vmem:[#allocation5 + $0x58] sm:$0xff]  ;;  %v1431_v19 = vld [vmem:[#allocation7 + $0x8] sm:$0xff]  }
  0x5f   :  { %1222 = vmatprep.subr.bf16.mxu0 %v149_v5  ;;  %v152_v16 = vpack.c.bf16 %v124_v14, %v123_v13  ;;  %v1430_v18 = vld [vmem:[#allocation7] sm:$0xff]   ;;  %v153_v21 = vpack.c.bf16 %v126_v17, %v125_v15  ;;  %v128_v22 = vld [vmem:[#allocation5 + $0x68] sm:$0xff]  ;;  %v1432_v23 = vld [vmem:[#allocation7 + $0x10] sm:$0xff]  }
  0x60   :  { %v127_v20 = vld [vmem:[#allocation5 + $0x60] sm:$0xff]  ;;  %1252 = vmatprep.subr.bf16.mxu1 %v1430_v18  ;;  %v129_v24 = vld [vmem:[#allocation5 + $0x70] sm:$0xff]  ;;  %v130_v25 = vld [vmem:[#allocation5 + $0x78] sm:$0xff] }
  0x61   :  { %1253 = vmatpush3.bf16.msra.mxu1 %v1430_v18  ;;  %v1433_v26 = vld [vmem:[#allocation7 + $0x18] sm:$0xff]   ;;  %v154_v27 = vpack.c.bf16 %v128_v22, %v127_v20  ;;  %v1434_v28 = vld [vmem:[#allocation7 + $0x20] sm:$0xff]   ;;  %v155_v29 = vpack.c.bf16 %v130_v25, %v129_v24  ;;  %v1435_v30 = vld [vmem:[#allocation7 + $0x28] sm:$0xff]  }
  0x62   :  { %1223 = vmatpush3.bf16.msra.mxu0 %v149_v5  ;;  %1254 = vmatprep.subr.bf16.mxu1 %v1431_v19  ;;  %v1727_v31 = vld [vmem:[#allocation2 + $0x8] sm:$0xff]   ;;  %v1729_v32 = vld [vmem:[#allocation2 + $0x10] sm:$0xff]   ;;  %v1733_v34 = vld [vmem:[#allocation2 + $0x18] sm:$0xff]  }
  0x63   :  { %1224 = vmatprep.subr.bf16.mxu0 %v150_v9  ;;  %v1436_v33 = vld [vmem:[#allocation7 + $0x30] sm:$0xff]   ;;  %v1735_v35 = vld [vmem:[#allocation2 + $0x20] sm:$0xff]   ;;  %v1739_v36 = vld [vmem:[#allocation2 + $0x28] sm:$0xff]  }
  0x64   :  { %v1741_v37 = vld [vmem:[#allocation2 + $0x30] sm:$0xff]   ;;  %v1745_v38 = vld [vmem:[#allocation2 + $0x38] sm:$0xff]   ;;  %v1438_v0 = vld [vmem:[#allocation8] sm:$0xff]  }
  0x65   :  { %1255 = vmatpush3.bf16.msra.mxu1 %v1431_v19  ;;  %v1437_v39 = vld [vmem:[#allocation7 + $0x38] sm:$0xff]   ;;  %v1439_v1 = vld [vmem:[#allocation8 + $0x8] sm:$0xff]   ;;  %v1440_v2 = vld [vmem:[#allocation8 + $0x10] sm:$0xff]  }
  0x66   :  { %1225 = vmatpush3.bf16.msra.mxu0 %v150_v9  ;;  %1256 = vmatprep.subr.bf16.mxu1 %v1432_v23  ;;  %v1441_v3 = vld [vmem:[#allocation8 + $0x18] sm:$0xff]   ;;  %v1442_v4 = vld [vmem:[#allocation8 + $0x20] sm:$0xff]   ;;  %v1443_v5 = vld [vmem:[#allocation8 + $0x28] sm:$0xff]  }
  0x67   :  { %1226 = vmatprep.subr.bf16.mxu0 %v151_v12  ;;  %v1444_v6 = vld [vmem:[#allocation8 + $0x30] sm:$0xff]   ;;  %v1097_v7 = vld [vmem:[%s1791_s3] ss:$0 sm:$0xff] }
  0x69   :  { %1257 = vmatpush3.bf16.msra.mxu1 %v1432_v23 }
  0x6a   :  { %1227 = vmatpush3.bf16.msra.mxu0 %v151_v12  ;;  %1258 = vmatprep.subr.bf16.mxu1 %v1433_v26 }
  0x6b   :  { %1228 = vmatprep.subr.bf16.mxu0 %v152_v16 }
  0x6d   :  { %1259 = vmatpush3.bf16.msra.mxu1 %v1433_v26 }
  0x6e   :  { %1229 = vmatpush3.bf16.msra.mxu0 %v152_v16  ;;  %1260 = vmatprep.subr.bf16.mxu1 %v1434_v28 }
  0x6f   :  { %1230 = vmatprep.subr.bf16.mxu0 %v153_v21 }
  0x71   :  { %1261 = vmatpush3.bf16.msra.mxu1 %v1434_v28 }
  0x72   :  { %1231 = vmatpush3.bf16.msra.mxu0 %v153_v21  ;;  %1262 = vmatprep.subr.bf16.mxu1 %v1435_v30 }
  0x73   :  { %1232 = vmatprep.subr.bf16.mxu0 %v154_v27 }
  0x75   :  { %1263 = vmatpush3.bf16.msra.mxu1 %v1435_v30 }
  0x76   :  { %1233 = vmatpush3.bf16.msra.mxu0 %v154_v27  ;;  %1264 = vmatprep.subr.bf16.mxu1 %v1436_v33 }
  0x77   :  { %1234 = vmatprep.subr.bf16.mxu0 %v155_v29 }
  0x79   :  { %1265 = vmatpush3.bf16.msra.mxu1 %v1436_v33 }
  0x7a   :  { %1235 = vmatpush3.bf16.msra.mxu0 %v155_v29  ;;  %1266 = vmatprep.subr.bf16.mxu1 %v1437_v39 }
  0x7d   :  { %1237 = vmatmul.mubr.bf16.vlgmr.msra.gmra.mrb[0].mxu0 %v1727_v31  ;;  %1267 = vmatpush3.bf16.msra.mxu1 %v1437_v39 }
  0x7e   :  { %1240 = vmatprep.mubr.bf16.mxu0 %v1729_v32  ;;  %1316 = vmatprep.subr.bf16.mxu1 %v1438_v0 }
  0x85   :  { %1241 = vmatmul.mubr.bf16.gmra.mrb[4].mxu0 %v1733_v34 }
  0x86   :  { %1244 = vmatprep.mubr.bf16.mxu0 %v1735_v35 }
  0x8d   :  { %1245 = vmatmul.mubr.bf16.gmra.mrb[8].mxu0 %v1739_v36 }
  0x8e   :  { %1248 = vmatprep.mubr.bf16.mxu0 %v1741_v37 }
  0x95   :  { %1249 = vmatmul.mubr.bf16.gmra.mrb[12].mxu0 %v1745_v38 }
  0x96   :  { %1300 = vmatprep.mubr.bf16.mxu0 %v1724_v11 }
 0x150   :  { %v1238_v40 = vpop.f32.mrb[0].mxu0 }
 0x151   :  { %v238_v41 = vpop.f32.mrb[1].mxu0 }
 0x152   :  { %v1239_v42 = vpop.f32.mrb[2].mxu0 }
 0x153   :  { %v302_v43 = vpack.c.bf16 %v1239_v42, %v1238_v40  ;;  %v241_v44 = vpop.f32.mrb[3].mxu0 }
 0x154   :  { %v301_v45 = vpack.c.bf16 %v241_v44, %v238_v41 }
 0x156   :  { %1268 = vmatprep.mubr.bf16.mxu1 %v301_v45 }
 0x157   :  { %1269 = vmatmul.mubr.bf16.vlgmr.msra.gmra.mrb[0].mxu1 %v302_v43 }
 0x158   :  { %v1242_v46 = vpop.f32.mrb[4].mxu0  ;;  %1317 = vmatpush3.bf16.msra.mxu1 %v1438_v0 }
 0x159   :  { %v254_v47 = vpop.f32.mrb[5].mxu0  ;;  %1318 = vmatprep.subr.bf16.mxu1 %v1439_v1 }
 0x15a   :  { %v1243_v48 = vpop.f32.mrb[6].mxu0 }
 0x15b   :  { %v304_v49 = vpack.c.bf16 %v1243_v48, %v1242_v46  ;;  %v257_v50 = vpop.f32.mrb[7].mxu0 }
 0x15c   :  { %v303_v51 = vpack.c.bf16 %v257_v50, %v254_v47  ;;  %1319 = vmatpush3.bf16.msra.mxu1 %v1439_v1 }
 0x15d   :  { %1320 = vmatprep.subr.bf16.mxu1 %v1440_v2 }
 0x15e   :  { %1272 = vmatprep.mubr.bf16.mxu1 %v303_v51 }
 0x15f   :  { %1273 = vmatmul.mubr.bf16.gmra.mrb[4].mxu1 %v304_v49 }
 0x160   :  { %v1246_v52 = vpop.f32.mrb[8].mxu0  ;;  %1321 = vmatpush3.bf16.msra.mxu1 %v1440_v2 }
 0x161   :  { %v270_v53 = vpop.f32.mrb[9].mxu0  ;;  %1322 = vmatprep.subr.bf16.mxu1 %v1441_v3 }
 0x162   :  { %v1247_v54 = vpop.f32.mrb[10].mxu0 }
 0x163   :  { %v306_v55 = vpack.c.bf16 %v1247_v54, %v1246_v52  ;;  %v273_v56 = vpop.f32.mrb[11].mxu0 }
 0x164   :  { %v305_v57 = vpack.c.bf16 %v273_v56, %v270_v53  ;;  %1323 = vmatpush3.bf16.msra.mxu1 %v1441_v3 }
 0x165   :  { %1324 = vmatprep.subr.bf16.mxu1 %v1442_v4 }
 0x166   :  { %1276 = vmatprep.mubr.bf16.mxu1 %v305_v57 }
 0x167   :  { %1277 = vmatmul.mubr.bf16.gmra.mrb[8].mxu1 %v306_v55 }
 0x168   :  { %v1250_v58 = vpop.f32.mrb[12].mxu0  ;;  %1325 = vmatpush3.bf16.msra.mxu1 %v1442_v4 }
 0x169   :  { %v286_v59 = vpop.f32.mrb[13].mxu0  ;;  %1326 = vmatprep.subr.bf16.mxu1 %v1443_v5 }
 0x16a   :  { %v1251_v60 = vpop.f32.mrb[14].mxu0 }
 0x16b   :  { %v308_v61 = vpack.c.bf16 %v1251_v60, %v1250_v58  ;;  %v289_v62 = vpop.f32.mrb[15].mxu0 }
 0x16c   :  { %v307_v63 = vpack.c.bf16 %v289_v62, %v286_v59  ;;  %1327 = vmatpush3.bf16.msra.mxu1 %v1443_v5 }
 0x16d   :  { %1328 = vmatprep.subr.bf16.mxu1 %v1444_v6 }
 0x16e   :  { %1280 = vmatprep.mubr.bf16.mxu1 %v307_v63 }
 0x16f   :  { %1281 = vmatmul.mubr.bf16.gmra.mrb[12].mxu1 %v308_v61 }
 0x170   :  { %1329 = vmatpush3.bf16.msra.mxu1 %v1444_v6 }
 0x22a   :  { %v1270_v8 = vpop.f32.mrb[0].mxu1 }
 0x22b   :  { %v406_v9 = vadd.f32 %v1270_v8, %v1097_v7  ;;  %v397_v10 = vpop.f32.mrb[1].mxu1 }
 0x22c   :  { %v398_v12 = vadd.f32 %v1097_v7, %v397_v10  ;;  %v1271_v13 = vpop.f32.mrb[2].mxu1 }
 0x22d   :  { %v409_v14 = vadd.f32 %v1271_v13, %v1097_v7  ;;  %v400_v15 = vpop.f32.mrb[3].mxu1  ;;  %v462_v17 = vmax.f32 %v406_v9, 0.0 }
 0x22e   :  { %v401_v16 = vadd.f32 %v1097_v7, %v400_v15  ;;  %v460_v19 = vmax.f32 %v398_v12, 0.0 }
 0x22f   :  { %v463_v18 = vmax.f32 %v409_v14, 0.0 }
 0x230   :  { %v461_v20 = vmax.f32 %v401_v16, 0.0 }
 0x231   :  { %v494_v21 = vpack.c.bf16 %v463_v18, %v462_v17 }
 0x232   :  { %v493_v22 = vpack.c.bf16 %v461_v20, %v460_v19  ;;  %v1274_v23 = vpop.f32.mrb[4].mxu1 }
 0x233   :  { %v422_v24 = vadd.f32 %v1274_v23, %v1097_v7  ;;  %v413_v25 = vpop.f32.mrb[5].mxu1 }
 0x234   :  { %v414_v26 = vadd.f32 %v1097_v7, %v413_v25  ;;  %v1275_v27 = vpop.f32.mrb[6].mxu1  ;;  %1284 = vmatprep.subr.bf16.mxu0 %v493_v22 }
 0x235   :  { %v425_v28 = vadd.f32 %v1275_v27, %v1097_v7  ;;  %v416_v29 = vpop.f32.mrb[7].mxu1  ;;  %1285 = vmatpush3.bf16.msra.mxu0 %v493_v22  ;;  %v466_v33 = vmax.f32 %v422_v24, 0.0 }
 0x236   :  { %v417_v30 = vadd.f32 %v1097_v7, %v416_v29  ;;  %1286 = vmatprep.subr.bf16.mxu0 %v494_v21  ;;  %v464_v40 = vmax.f32 %v414_v26, 0.0 }
 0x237   :  { %v467_v39 = vmax.f32 %v425_v28, 0.0 }
 0x238   :  { %v465_v41 = vmax.f32 %v417_v30, 0.0 }
 0x239   :  { %v496_v42 = vpack.c.bf16 %v467_v39, %v466_v33  ;;  %1287 = vmatpush3.bf16.msra.mxu0 %v494_v21 }
 0x23a   :  { %v495_v43 = vpack.c.bf16 %v465_v41, %v464_v40  ;;  %v1278_v44 = vpop.f32.mrb[8].mxu1  ;;  %v1446_v40 = vld [vmem:[#allocation10] sm:$0xff]   ;;  %v1447_v41 = vld [vmem:[#allocation10 + $0x8] sm:$0xff]  }
 0x23b   :  { %v438_v45 = vadd.f32 %v1278_v44, %v1097_v7  ;;  %v429_v46 = vpop.f32.mrb[9].mxu1  ;;  %v1450_v44 = vld [vmem:[#allocation10 + $0x20] sm:$0xff]  }
 0x23c   :  { %v430_v47 = vadd.f32 %v1097_v7, %v429_v46  ;;  %v1279_v48 = vpop.f32.mrb[10].mxu1  ;;  %1288 = vmatprep.subr.bf16.mxu0 %v495_v43  ;;  %v1452_v46 = vld [vmem:[#allocation10 + $0x30] sm:$0xff]  }
 0x23d   :  { %v441_v49 = vadd.f32 %v1279_v48, %v1097_v7  ;;  %v432_v50 = vpop.f32.mrb[11].mxu1  ;;  %1289 = vmatpush3.bf16.msra.mxu0 %v495_v43  ;;  %v470_v52 = vmax.f32 %v438_v45, 0.0  ;;  %v1449_v43 = vld [vmem:[#allocation10 + $0x18] sm:$0xff]   ;;  %v1451_v45 = vld [vmem:[#allocation10 + $0x28] sm:$0xff]  }
 0x23e   :  { %v433_v51 = vadd.f32 %v1097_v7, %v432_v50  ;;  %1290 = vmatprep.subr.bf16.mxu0 %v496_v42  ;;  %v468_v54 = vmax.f32 %v430_v47, 0.0  ;;  %v1106_v47 = vld [vmem:[%s1793_s5] ss:$0 sm:$0xff] }
 0x23f   :  { %v471_v53 = vmax.f32 %v441_v49, 0.0 }
 0x240   :  { %v469_v55 = vmax.f32 %v433_v51, 0.0 }
 0x241   :  { %v498_v56 = vpack.c.bf16 %v471_v53, %v470_v52  ;;  %1291 = vmatpush3.bf16.msra.mxu0 %v496_v42  ;;  %v1448_v42 = vld [vmem:[#allocation10 + $0x10] sm:$0xff]  }
 0x242   :  { %v497_v57 = vpack.c.bf16 %v469_v55, %v468_v54  ;;  %v1282_v58 = vpop.f32.mrb[12].mxu1 }
 0x243   :  { %v454_v59 = vadd.f32 %v1282_v58, %v1097_v7  ;;  %v445_v60 = vpop.f32.mrb[13].mxu1 }
 0x244   :  { %v446_v61 = vadd.f32 %v1097_v7, %v445_v60  ;;  %v1283_v62 = vpop.f32.mrb[14].mxu1  ;;  %1292 = vmatprep.subr.bf16.mxu0 %v497_v57 }
 0x245   :  { %v457_v63 = vadd.f32 %v1283_v62, %v1097_v7  ;;  %v448_v0 = vpop.f32.mrb[15].mxu1  ;;  %1293 = vmatpush3.bf16.msra.mxu0 %v497_v57  ;;  %v474_v2 = vmax.f32 %v454_v59, 0.0 }
 0x246   :  { %v449_v1 = vadd.f32 %v1097_v7, %v448_v0  ;;  %1294 = vmatprep.subr.bf16.mxu0 %v498_v56  ;;  %v472_v4 = vmax.f32 %v446_v61, 0.0  ;;  %v1445_v7 = vld [vmem:[#allocation8 + $0x38] sm:$0xff]  }
 0x247   :  { %v475_v3 = vmax.f32 %v457_v63, 0.0  ;;  %1330 = vmatprep.subr.bf16.mxu1 %v1445_v7 }
 0x248   :  { %v473_v5 = vmax.f32 %v449_v1, 0.0  ;;  %1331 = vmatpush3.bf16.msra.mxu1 %v1445_v7 }
 0x249   :  { %v500_v6 = vpack.c.bf16 %v475_v3, %v474_v2  ;;  %1295 = vmatpush3.bf16.msra.mxu0 %v498_v56  ;;  %1380 = vmatprep.subr.bf16.mxu1 %v1446_v40 }
 0x24a   :  { %v499_v8 = vpack.c.bf16 %v473_v5, %v472_v4 }
 0x24c   :  { %1296 = vmatprep.subr.bf16.mxu0 %v499_v8 }
 0x24d   :  { %1297 = vmatpush3.bf16.msra.mxu0 %v499_v8 }
 0x24e   :  { %1298 = vmatprep.subr.bf16.mxu0 %v500_v6 }
 0x251   :  { %1299 = vmatpush3.bf16.msra.mxu0 %v500_v6 }
 0x254   :  { %1301 = vmatmul.mubr.bf16.vlgmr.msra.gmra.mrb[16].mxu0 %v1727_v31 }
 0x255   :  { %1304 = vmatprep.mubr.bf16.mxu0 %v1729_v32 }
 0x25c   :  { %1305 = vmatmul.mubr.bf16.gmra.mrb[20].mxu0 %v1733_v34 }
 0x25d   :  { %1308 = vmatprep.mubr.bf16.mxu0 %v1735_v35 }
 0x264   :  { %1309 = vmatmul.mubr.bf16.gmra.mrb[24].mxu0 %v1739_v36 }
 0x265   :  { %1312 = vmatprep.mubr.bf16.mxu0 %v1741_v37 }
 0x26c   :  { %1313 = vmatmul.mubr.bf16.gmra.mrb[28].mxu0 %v1745_v38 }
 0x26d   :  { %1364 = vmatprep.mubr.bf16.mxu0 %v1724_v11 }
 0x327   :  { %v1302_v9 = vpop.f32.mrb[16].mxu0 }
 0x328   :  { %v535_v10 = vpop.f32.mrb[17].mxu0 }
 0x329   :  { %v1303_v12 = vpop.f32.mrb[18].mxu0 }
 0x32a   :  { %v599_v13 = vpack.c.bf16 %v1303_v12, %v1302_v9  ;;  %v538_v14 = vpop.f32.mrb[19].mxu0 }
 0x32b   :  { %v598_v15 = vpack.c.bf16 %v538_v14, %v535_v10 }
 0x32d   :  { %1332 = vmatprep.mubr.bf16.mxu1 %v598_v15 }
 0x32e   :  { %1333 = vmatmul.mubr.bf16.vlgmr.msra.gmra.mrb[16].mxu1 %v599_v13 }
 0x32f   :  { %v1306_v16 = vpop.f32.mrb[20].mxu0  ;;  %1381 = vmatpush3.bf16.msra.mxu1 %v1446_v40 }
 0x330   :  { %v551_v17 = vpop.f32.mrb[21].mxu0  ;;  %1382 = vmatprep.subr.bf16.mxu1 %v1447_v41 }
 0x331   :  { %v1307_v18 = vpop.f32.mrb[22].mxu0 }
 0x332   :  { %v601_v19 = vpack.c.bf16 %v1307_v18, %v1306_v16  ;;  %v554_v20 = vpop.f32.mrb[23].mxu0 }
 0x333   :  { %v600_v21 = vpack.c.bf16 %v554_v20, %v551_v17  ;;  %1383 = vmatpush3.bf16.msra.mxu1 %v1447_v41 }
 0x334   :  { %1384 = vmatprep.subr.bf16.mxu1 %v1448_v42 }
 0x335   :  { %1336 = vmatprep.mubr.bf16.mxu1 %v600_v21 }
 0x336   :  { %1337 = vmatmul.mubr.bf16.gmra.mrb[20].mxu1 %v601_v19 }
 0x337   :  { %v1310_v11 = vpop.f32.mrb[24].mxu0  ;;  %1385 = vmatpush3.bf16.msra.mxu1 %v1448_v42 }
 0x338   :  { %v567_v22 = vpop.f32.mrb[25].mxu0  ;;  %1386 = vmatprep.subr.bf16.mxu1 %v1449_v43 }
 0x339   :  { %v1311_v23 = vpop.f32.mrb[26].mxu0 }
 0x33a   :  { %v603_v24 = vpack.c.bf16 %v1311_v23, %v1310_v11  ;;  %v570_v25 = vpop.f32.mrb[27].mxu0 }
 0x33b   :  { %v602_v26 = vpack.c.bf16 %v570_v25, %v567_v22  ;;  %1387 = vmatpush3.bf16.msra.mxu1 %v1449_v43 }
 0x33c   :  { %1388 = vmatprep.subr.bf16.mxu1 %v1450_v44 }
 0x33d   :  { %1340 = vmatprep.mubr.bf16.mxu1 %v602_v26 }
 0x33e   :  { %1341 = vmatmul.mubr.bf16.gmra.mrb[24].mxu1 %v603_v24 }
 0x33f   :  { %v1314_v27 = vpop.f32.mrb[28].mxu0  ;;  %1389 = vmatpush3.bf16.msra.mxu1 %v1450_v44 }
 0x340   :  { %v583_v28 = vpop.f32.mrb[29].mxu0  ;;  %1390 = vmatprep.subr.bf16.mxu1 %v1451_v45 }
 0x341   :  { %v1315_v29 = vpop.f32.mrb[30].mxu0 }
 0x342   :  { %v605_v30 = vpack.c.bf16 %v1315_v29, %v1314_v27  ;;  %v586_v33 = vpop.f32.mrb[31].mxu0 }
 0x343   :  { %v604_v39 = vpack.c.bf16 %v586_v33, %v583_v28  ;;  %1391 = vmatpush3.bf16.msra.mxu1 %v1451_v45 }
 0x344   :  { %1392 = vmatprep.subr.bf16.mxu1 %v1452_v46 }
 0x345   :  { %1344 = vmatprep.mubr.bf16.mxu1 %v604_v39 }
 0x346   :  { %1345 = vmatmul.mubr.bf16.gmra.mrb[28].mxu1 %v605_v30 }
 0x347   :  { %1393 = vmatpush3.bf16.msra.mxu1 %v1452_v46 }
 0x401   :  { %v1334_v48 = vpop.f32.mrb[16].mxu1 }
 0x402   :  { %v703_v49 = vadd.f32 %v1334_v48, %v1106_v47  ;;  %v694_v50 = vpop.f32.mrb[17].mxu1 }
 0x403   :  { %v695_v51 = vadd.f32 %v1106_v47, %v694_v50  ;;  %v1335_v52 = vpop.f32.mrb[18].mxu1 }
 0x404   :  { %v706_v53 = vadd.f32 %v1335_v52, %v1106_v47  ;;  %v697_v54 = vpop.f32.mrb[19].mxu1  ;;  %v759_v56 = vmax.f32 %v703_v49, 0.0 }
 0x405   :  { %v698_v55 = vadd.f32 %v1106_v47, %v697_v54  ;;  %v757_v58 = vmax.f32 %v695_v51, 0.0 }
 0x406   :  { %v760_v57 = vmax.f32 %v706_v53, 0.0 }
 0x407   :  { %v758_v59 = vmax.f32 %v698_v55, 0.0 }
 0x408   :  { %v791_v60 = vpack.c.bf16 %v760_v57, %v759_v56 }
 0x409   :  { %v790_v61 = vpack.c.bf16 %v758_v59, %v757_v58  ;;  %v1338_v62 = vpop.f32.mrb[20].mxu1 }
 0x40a   :  { %v719_v63 = vadd.f32 %v1338_v62, %v1106_v47  ;;  %v710_v0 = vpop.f32.mrb[21].mxu1 }
 0x40b   :  { %v711_v1 = vadd.f32 %v1106_v47, %v710_v0  ;;  %v1339_v2 = vpop.f32.mrb[22].mxu1  ;;  %1348 = vmatprep.subr.bf16.mxu0 %v790_v61 }
 0x40c   :  { %v722_v3 = vadd.f32 %v1339_v2, %v1106_v47  ;;  %v713_v4 = vpop.f32.mrb[23].mxu1  ;;  %1349 = vmatpush3.bf16.msra.mxu0 %v790_v61  ;;  %v763_v6 = vmax.f32 %v719_v63, 0.0 }
 0x40d   :  { %v714_v5 = vadd.f32 %v1106_v47, %v713_v4  ;;  %1350 = vmatprep.subr.bf16.mxu0 %v791_v60  ;;  %v761_v7 = vmax.f32 %v711_v1, 0.0  ;;  %v1115_v1 = vld [vmem:[%s1795_s7] ss:$0 sm:$0xff]  ;;  %s1603_s7 = smov [#allocation11]  }
 0x40e   :  { %v764_v8 = vmax.f32 %v722_v3, 0.0  ;;  %s1075_s27 = sshll.u32 %s1603_s7, 4  ;;  %s1076_s27 = int_to_ptr.vmem [resolvable:$true] %s1075_s27 }
 0x40f   :  { %v762_v9 = vmax.f32 %v714_v5, 0.0  ;;  %s1564_s29 = scalar_lea.vmem %s1076_s27, 2048  ;;  %p1569_p13 = scmp.lt.s32.totalorder %s1076_s27, %s1076_s27 }
 0x410   :  { %v793_v10 = vpack.c.bf16 %v764_v8, %v763_v6  ;;  %1351 = vmatpush3.bf16.msra.mxu0 %v791_v60  ;;  %p1565_p12 = scmp.ne.s32.totalorder %s1076_s27, %s1564_s29  ;;  %p1570_p0 = scmp.lt.s32.totalorder %s1564_s29, %s1564_s29 }
 0x411   :  { %v792_v12 = vpack.c.bf16 %v762_v9, %v761_v7  ;;  %v1342_v13 = vpop.f32.mrb[24].mxu1 }
 0x412   :  { %v735_v14 = vadd.f32 %v1342_v13, %v1106_v47  ;;  %v726_v15 = vpop.f32.mrb[25].mxu1  ;;  %p1571_p1 = por %p1570_p0, %p1569_p13 }
 0x413   :  { %v727_v16 = vadd.f32 %v1106_v47, %v726_v15  ;;  %v1343_v17 = vpop.f32.mrb[26].mxu1  ;;  %1352 = vmatprep.subr.bf16.mxu0 %v792_v12 }
 0x414   :  { %v738_v18 = vadd.f32 %v1343_v17, %v1106_v47  ;;  %v729_v19 = vpop.f32.mrb[27].mxu1  ;;  %1353 = vmatpush3.bf16.msra.mxu0 %v792_v12  ;;  %v767_v21 = vmax.f32 %v735_v14, 0.0  ;;  %p1572_p2 = pnand %p1571_p1, %p1565_p12 }
 0x415   :  { %v730_v20 = vadd.f32 %v1106_v47, %v729_v19  ;;  %1354 = vmatprep.subr.bf16.mxu0 %v793_v10  ;;  %v765_v22 = vmax.f32 %v727_v16, 0.0 }
 0x416   :  { %v768_v11 = vmax.f32 %v738_v18, 0.0 }
 0x417   :  { %v766_v23 = vmax.f32 %v730_v20, 0.0 }
 0x418   :  { %v795_v24 = vpack.c.bf16 %v768_v11, %v767_v21  ;;  %1355 = vmatpush3.bf16.msra.mxu0 %v793_v10 }
 0x419   :  { %v794_v25 = vpack.c.bf16 %v766_v23, %v765_v22  ;;  %v1346_v26 = vpop.f32.mrb[28].mxu1 }
 0x41a   :  { %v751_v27 = vadd.f32 %v1346_v26, %v1106_v47  ;;  %v742_v28 = vpop.f32.mrb[29].mxu1 }
 0x41b   :  { %v743_v29 = vadd.f32 %v1106_v47, %v742_v28  ;;  %v1347_v30 = vpop.f32.mrb[30].mxu1  ;;  %1356 = vmatprep.subr.bf16.mxu0 %v794_v25 }
 0x41c   :  { %v754_v33 = vadd.f32 %v1347_v30, %v1106_v47  ;;  %v745_v39 = vpop.f32.mrb[31].mxu1  ;;  %1357 = vmatpush3.bf16.msra.mxu0 %v794_v25  ;;  %v771_v41 = vmax.f32 %v751_v27, 0.0 }
 0x41d   :  { %v746_v40 = vadd.f32 %v1106_v47, %v745_v39  ;;  %1358 = vmatprep.subr.bf16.mxu0 %v795_v24  ;;  %v769_v43 = vmax.f32 %v743_v29, 0.0  ;;  %v1453_v47 = vld [vmem:[#allocation10 + $0x38] sm:$0xff]  }
 0x41e   :  { %v772_v42 = vmax.f32 %v754_v33, 0.0  ;;  %1394 = vmatprep.subr.bf16.mxu1 %v1453_v47 }
 0x41f   :  { %v770_v44 = vmax.f32 %v746_v40, 0.0  ;;  %1395 = vmatpush3.bf16.msra.mxu1 %v1453_v47 }
 0x420   :  { %v797_v45 = vpack.c.bf16 %v772_v42, %v771_v41  ;;  %1359 = vmatpush3.bf16.msra.mxu0 %v795_v24 }
 0x421   :  { %v796_v46 = vpack.c.bf16 %v770_v44, %v769_v43 }
 0x423   :  { %1360 = vmatprep.subr.bf16.mxu0 %v796_v46 }
 0x424   :  { %1361 = vmatpush3.bf16.msra.mxu0 %v796_v46 }
 0x425   :  { %1362 = vmatprep.subr.bf16.mxu0 %v797_v45 }
 0x428   :  { %1363 = vmatpush3.bf16.msra.mxu0 %v797_v45 }
 0x42b   :  { %1365 = vmatmul.mubr.bf16.vlgmr.msra.gmra.mrb[32].mxu0 %v1727_v31 }
 0x42c   :  { %1368 = vmatprep.mubr.bf16.mxu0 %v1729_v32 }
 0x433   :  { %1369 = vmatmul.mubr.bf16.gmra.mrb[36].mxu0 %v1733_v34 }
 0x434   :  { %1372 = vmatprep.mubr.bf16.mxu0 %v1735_v35 }
 0x43b   :  { %1373 = vmatmul.mubr.bf16.gmra.mrb[40].mxu0 %v1739_v36 }
 0x43c   :  { %1376 = vmatprep.mubr.bf16.mxu0 %v1741_v37 }
 0x443   :  { %1377 = vmatmul.mubr.bf16.gmra.mrb[44].mxu0 %v1745_v38 }
 0x4fe   :  { %v1366_v48 = vpop.f32.mrb[32].mxu0 }
 0x4ff   :  { %v832_v49 = vpop.f32.mrb[33].mxu0 }
 0x500   :  { %v1367_v50 = vpop.f32.mrb[34].mxu0 }
 0x501   :  { %v896_v51 = vpack.c.bf16 %v1367_v50, %v1366_v48  ;;  %v835_v31 = vpop.f32.mrb[35].mxu0 }
 0x502   :  { %v895_v52 = vpack.c.bf16 %v835_v31, %v832_v49 }
 0x504   :  { %1396 = vmatprep.mubr.bf16.mxu1 %v895_v52 }
 0x505   :  { %1397 = vmatmul.mubr.bf16.vlgmr.msra.gmra.mrb[32].mxu1 %v896_v51 }
 0x506   :  { %v1370_v32 = vpop.f32.mrb[36].mxu0 }
 0x507   :  { %v848_v34 = vpop.f32.mrb[37].mxu0 }
 0x508   :  { %v1371_v35 = vpop.f32.mrb[38].mxu0 }
 0x509   :  { %v898_v53 = vpack.c.bf16 %v1371_v35, %v1370_v32  ;;  %v851_v36 = vpop.f32.mrb[39].mxu0 }
 0x50a   :  { %v897_v54 = vpack.c.bf16 %v851_v36, %v848_v34 }
 0x50c   :  { %1400 = vmatprep.mubr.bf16.mxu1 %v897_v54 }
 0x50d   :  { %1401 = vmatmul.mubr.bf16.gmra.mrb[36].mxu1 %v898_v53 }
 0x50e   :  { %v1374_v37 = vpop.f32.mrb[40].mxu0 }
 0x50f   :  { %v864_v38 = vpop.f32.mrb[41].mxu0 }
 0x510   :  { %v1375_v55 = vpop.f32.mrb[42].mxu0 }
 0x511   :  { %v900_v56 = vpack.c.bf16 %v1375_v55, %v1374_v37  ;;  %v867_v57 = vpop.f32.mrb[43].mxu0 }
 0x512   :  { %v899_v58 = vpack.c.bf16 %v867_v57, %v864_v38 }
 0x514   :  { %1404 = vmatprep.mubr.bf16.mxu1 %v899_v58 }
 0x515   :  { %1405 = vmatmul.mubr.bf16.gmra.mrb[40].mxu1 %v900_v56 }
 0x516   :  { %v1378_v59 = vpop.f32.mrb[44].mxu0 }
 0x517   :  { %v880_v60 = vpop.f32.mrb[45].mxu0 }
 0x518   :  { %v1379_v61 = vpop.f32.mrb[46].mxu0 }
 0x519   :  { %v902_v62 = vpack.c.bf16 %v1379_v61, %v1378_v59  ;;  %v883_v63 = vpop.f32.mrb[47].mxu0 }
 0x51a   :  { %v901_v0 = vpack.c.bf16 %v883_v63, %v880_v60 }
 0x51c   :  { %1408 = vmatprep.mubr.bf16.mxu1 %v901_v0 }
 0x51d   :  { %1409 = vmatmul.mubr.bf16.gmra.mrb[44].mxu1 %v902_v62 }
 0x5d8   :  { %v1398_v2 = vpop.f32.mrb[32].mxu1 }
 0x5d9   :  { %v1000_v3 = vadd.f32 %v1398_v2, %v1115_v1  ;;  %v991_v4 = vpop.f32.mrb[33].mxu1 }
 0x5da   :  { %v992_v5 = vadd.f32 %v1115_v1, %v991_v4  ;;  %v1399_v6 = vpop.f32.mrb[34].mxu1 }
 0x5db   :  { %1056 = vst [vmem:[#allocation11 + $0x10] sm:$0xff] %v1000_v3  ;;  %v1003_v8 = vadd.f32 %v1399_v6, %v1115_v1  ;;  %v994_v7 = vpop.f32.mrb[35].mxu1 }
 0x5dc   :  { %1054 = vst [vmem:[#allocation11] sm:$0xff] %v992_v5  ;;  %v995_v9 = vadd.f32 %v1115_v1, %v994_v7 }
 0x5dd   :  { %1057 = vst [vmem:[#allocation11 + $0x18] sm:$0xff] %v1003_v8 }
 0x5de   :  { %1055 = vst [vmem:[#allocation11 + $0x8] sm:$0xff] %v995_v9 }
 0x5e0   :  { %v1402_v10 = vpop.f32.mrb[36].mxu1 }
 0x5e1   :  { %v1016_v12 = vadd.f32 %v1402_v10, %v1115_v1  ;;  %v1007_v13 = vpop.f32.mrb[37].mxu1 }
 0x5e2   :  { %v1008_v14 = vadd.f32 %v1115_v1, %v1007_v13  ;;  %v1403_v15 = vpop.f32.mrb[38].mxu1 }
 0x5e3   :  { %1060 = vst [vmem:[#allocation11 + $0x30] sm:$0xff] %v1016_v12  ;;  %v1019_v16 = vadd.f32 %v1403_v15, %v1115_v1  ;;  %v1010_v17 = vpop.f32.mrb[39].mxu1 }
 0x5e4   :  { %1058 = vst [vmem:[#allocation11 + $0x20] sm:$0xff] %v1008_v14  ;;  %v1011_v18 = vadd.f32 %v1115_v1, %v1010_v17 }
 0x5e5   :  { %1061 = vst [vmem:[#allocation11 + $0x38] sm:$0xff] %v1019_v16 }
 0x5e6   :  { %1059 = vst [vmem:[#allocation11 + $0x28] sm:$0xff] %v1011_v18 }
 0x5e8   :  { %v1406_v19 = vpop.f32.mrb[40].mxu1 }
 0x5e9   :  { %v1032_v20 = vadd.f32 %v1406_v19, %v1115_v1  ;;  %v1023_v21 = vpop.f32.mrb[41].mxu1 }
 0x5ea   :  { %v1024_v11 = vadd.f32 %v1115_v1, %v1023_v21  ;;  %v1407_v22 = vpop.f32.mrb[42].mxu1 }
 0x5eb   :  { %1064 = vst [vmem:[#allocation11 + $0x50] sm:$0xff] %v1032_v20  ;;  %v1035_v23 = vadd.f32 %v1407_v22, %v1115_v1  ;;  %v1026_v24 = vpop.f32.mrb[43].mxu1 }
 0x5ec   :  { %1062 = vst [vmem:[#allocation11 + $0x40] sm:$0xff] %v1024_v11  ;;  %v1027_v25 = vadd.f32 %v1115_v1, %v1026_v24 }
 0x5ed   :  { %1065 = vst [vmem:[#allocation11 + $0x58] sm:$0xff] %v1035_v23 }
 0x5ee   :  { %1063 = vst [vmem:[#allocation11 + $0x48] sm:$0xff] %v1027_v25 }
 0x5f0   :  { %v1410_v26 = vpop.f32.mrb[44].mxu1 }
 0x5f1   :  { %v1048_v27 = vadd.f32 %v1410_v26, %v1115_v1  ;;  %v1039_v28 = vpop.f32.mrb[45].mxu1 }
 0x5f2   :  { %v1040_v29 = vadd.f32 %v1115_v1, %v1039_v28  ;;  %v1411_v30 = vpop.f32.mrb[46].mxu1 }
 0x5f3   :  { %1068 = vst [vmem:[#allocation11 + $0x70] sm:$0xff] %v1048_v27  ;;  %v1051_v33 = vadd.f32 %v1411_v30, %v1115_v1  ;;  %v1042_v39 = vpop.f32.mrb[47].mxu1 }
 0x5f4   :  { %1066 = vst [vmem:[#allocation11 + $0x60] sm:$0xff] %v1040_v29  ;;  %v1043_v40 = vadd.f32 %v1115_v1, %v1042_v39 }
 0x5f5   :  { %1069 = vst [vmem:[#allocation11 + $0x78] sm:$0xff] %v1051_v33 }
 0x5f6   :  { %1067 = vst [vmem:[#allocation11 + $0x68] sm:$0xff] %v1043_v40 }
 0x5f7   :  { %1575 = shalt.err (!%p1572_p2)
}
 0x5f8   :  { %s1576_s10 = scalar_lea.hbm %s1796_s8, 2048 }
 0x5f9   :  { %p1577_p3 = scmp.ne.s32.totalorder %s1796_s8, %s1576_s10  ;;  %p1580_p4 = scmp.lt.u32.totalorder %s1576_s10, %s1796_s8 }
 0x5fb   :  { %p1582_p5 = pnand %p1580_p4, %p1577_p3 }
 0x5fd   :  { %1585 = shalt.err (!%p1582_p5)
}
 0x5fe   :  { %1081 = dma.vmem_to_hbm [thread:$0]  %s1076_s27, 2048, %s1796_s8, [#allocation4], %s1595_s15, %s1595_s15, %s1596_s16  }
 0x5ff   :  { %1592 = dma.done.wait [#allocation4], 2048  }
 0x600   :  { %1593 = vsyncadd [#allocation4], 4294965248 }
 0x601   :  { %1085 = vsyncpa [#allocation3], 1 }
 0x602   :  { %1086 = vsyncpa [#allocation6], 1 }
 0x603   :  { %1087 = vsyncpa [#allocation9], 1 }
 0x604   :  { %1088 = vsyncpa [#allocation4], 1 }

</bundles_post_ra>
